<compile_context>
chip_gen: v6e
topology: v6e:2x2x1
jax: 0.10.0
libtpu: 0.0.40
codegen_flags: <defaults>
</compile_context>

<pallas_src>
import jax
import jax.numpy as jnp
from jax.experimental import pallas as pl
from jax.experimental.pallas import tpu as pltpu

# ---------------- small shapes implied by the module ----------------
N_NODES = 3
NFEAT = 6
NHID = 18
NCLASS = 6
NHEADS = 10
ALPHA = 0.1            # LeakyReLU negative slope
NEG_BIG = -9e15        # the -9e15 mask constant from the reference


# ---------------- in-kernel math helpers ----------------
def _leaky_relu(x, alpha):
    return jnp.where(x > 0, x, alpha * x)


def _elu(x):
    return jnp.where(x > 0, x, jnp.exp(jnp.minimum(x, 0.0)) - 1.0)


# ---------------- single fused GATRegress kernel ----------------
def gat_regress_kernel(x_ref, adj_ref, wa1_ref, qa2_ref, v_ref, b_ref, out_ref):
    x = x_ref[...]                                                      # (N, NFEAT)
    adj = adj_ref[...]                                                  # (N, N)
    x_b = jnp.broadcast_to(x[None, :, :], (NHEADS, N_NODES, NFEAT))     # tile-replicated

    # --- per-head attention logits: a-vectors already folded into W/Q host-side,
    #     so both logit halves for all 10 heads are two batched MXU matmuls.
    e1 = jnp.einsum('hnf,hfo->hno', x_b, wa1_ref[...],
                    preferred_element_type=jnp.float32)                 # (H, N, 1): h_i . a1_h
    e2 = jnp.einsum('hif,hjf->hij', qa2_ref[...], x_b,
                    preferred_element_type=jnp.float32)                 # (H, 1, N): q_j . a2_h
    e = _leaky_relu(e1 + e2, ALPHA)                                     # (H, N, N)

    # --- ONE batched masked softmax for all heads (1 max, 1 exp, 1 sum, 1 reciprocal)
    masked = jnp.where(adj[None, :, :] > 0, e, NEG_BIG)
    m = jnp.max(masked, axis=-1, keepdims=True)
    p = jnp.exp(masked - m)
    denom = jnp.sum(p, axis=-1, keepdims=True)
    attn = p * pl.reciprocal(denom, approx=True)   # EUP slot; exact fallback: p / denom
    # TODO(synk): F.dropout(attention, p, training=True) is stochastic; identity (eval mode).

    # --- V projection + attention apply: standard batched MXU matmuls (MXU was idle)
    v_heads = jnp.einsum('hnf,hfd->hnd', x_b, v_ref[...],
                         preferred_element_type=jnp.float32)            # (H, N, NHID)
    h_heads = jnp.einsum('hij,hjd->hid', attn, v_heads,
                         preferred_element_type=jnp.float32)            # (H, N, NHID)
    he = _elu(h_heads)                             # concat=True heads apply elu

    # --- out_att: per-head packed [Wo_k@a1o | Qo_k@a2o | Vo_k] blocks, ACCUMULATED over
    #     heads instead of concatenating head outputs along the lane axis.
    acc_h = jnp.einsum('hnd,hdo->hno', he, b_ref[...],
                       preferred_element_type=jnp.float32)              # (H, N, 2+NCLASS)
    acc = jnp.sum(acc_h, axis=0)                   # (N, 2+NCLASS) columns = [e1o | e2o | vp]
    e1o = acc[:, 0:1]
    e2o = acc[:, 1:2]
    vp = acc[:, 2:]
    eo = _leaky_relu(e1o + e2o.T, ALPHA)           # (N, N); the only remaining transpose
    masked_o = jnp.where(adj > 0, eo, NEG_BIG)
    mo = jnp.max(masked_o, axis=1, keepdims=True)
    po = jnp.exp(masked_o - mo)
    attn_o = po * pl.reciprocal(jnp.sum(po, axis=1, keepdims=True), approx=True)
    h_prime = jnp.dot(attn_o, vp, preferred_element_type=jnp.float32)   # (N, NCLASS) on MXU
    out_ref[...] = _elu(h_prime)                   # outer F.elu in GATRegress.forward


def gat_regress_forward(p, x, adj):
    # Grid-less call: total footprint is KBs, so no tiling/pipelining is warranted.
    # (For many-graph throughput, add a leading batch grid axis with weight blocks pinned.)
    vspec = pl.BlockSpec(memory_space=pltpu.MemorySpace.VMEM)   # whole array, VMEM-resident
    out = pl.pallas_call(
        gat_regress_kernel,
        out_shape=jax.ShapeDtypeStruct((N_NODES, NCLASS), jnp.float32),
        in_specs=[vspec] * 6,
        out_specs=vspec,
    )(x, adj, p['Wa1'], p['Qa2'], p['V'], p['B'])
    return out.reshape(-1)               # == x.flatten() in the torch forward


# ---------------- deterministic parameter init (torch xavier_uniform, gain=1.414) ----------------
def _xavier(key, shape, gain=1.414):
    fan_in, fan_out = shape[-2], shape[-1]
    limit = gain * (6.0 / (fan_in + fan_out)) ** 0.5
    return jax.random.uniform(key, shape, jnp.float32, -limit, limit)


def init_params(key):
    ks = jax.random.split(key, 8)
    return {
        'Wh': _xavier(ks[0], (NHEADS, NFEAT, NHID)),
        'Qh': _xavier(ks[1], (NHEADS, NFEAT, NHID)),
        'Vh': _xavier(ks[2], (NHEADS, NFEAT, NHID)),
        'ah': _xavier(ks[3], (NHEADS, 2 * NHID, 1)),
        'Wo': _xavier(ks[4], (NHID * NHEADS, NCLASS)),
        'Qo': _xavier(ks[5], (NHID * NHEADS, NCLASS)),
        'Vo': _xavier(ks[6], (NHID * NHEADS, NCLASS)),
        'ao': _xavier(ks[7], (2 * NCLASS, 1)),
    }


def pack_params(raw):
    """One-time host-side layout transform (perf-review recs #1/#2):
       - fold the attention vectors into the head projections,
       - pack the out-layer weights per head as [Wo_k@a1o | Qo_k@a2o | Vo_k]."""
    a1 = raw['ah'][:, :NHID, 0]                                    # (H, NHID)
    a2 = raw['ah'][:, NHID:, 0]                                    # (H, NHID)
    wa1 = jnp.einsum('hfd,hd->hf', raw['Wh'], a1)[:, :, None]      # (H, NFEAT, 1)
    qa2 = jnp.einsum('hfd,hd->hf', raw['Qh'], a2)[:, None, :]      # (H, 1, NFEAT)

    wo_h = raw['Wo'].reshape(NHEADS, NHID, NCLASS)                 # Wo_k = Wo[k*NHID:(k+1)*NHID]
    qo_h = raw['Qo'].reshape(NHEADS, NHID, NCLASS)
    vo_h = raw['Vo'].reshape(NHEADS, NHID, NCLASS)
    a1o = raw['ao'][:NCLASS, 0]
    a2o = raw['ao'][NCLASS:, 0]
    b_stack = jnp.concatenate([
        jnp.einsum('hdo,o->hd', wo_h, a1o)[:, :, None],            # col 0: e1o contribution
        jnp.einsum('hdo,o->hd', qo_h, a2o)[:, :, None],            # col 1: e2o contribution
        vo_h,                                                      # cols 2..: vp contribution
    ], axis=2)                                                     # (H, NHID, 2 + NCLASS)

    return {'Wa1': wa1, 'Qa2': qa2, 'V': raw['Vh'], 'B': b_stack}


# ---------------- pure-JAX reference (mirrors the torch module, eval mode) ----------------
def _ref_gat_layer(x, adj, W, Q, V, a, concat):
    h = x @ W
    q = x @ Q
    v = x @ V
    d = W.shape[1]
    e = h @ a[:d] + (q @ a[d:]).T
    e = jnp.where(e > 0, e, ALPHA * e)
    e = jnp.where(adj > 0, e, NEG_BIG)
    attn = jax.nn.softmax(e, axis=1)
    hp = attn @ v
    return jax.nn.elu(hp) if concat else hp


def gat_regress_reference(raw, x, adj):
    heads = [_ref_gat_layer(x, adj, raw['Wh'][k], raw['Qh'][k], raw['Vh'][k],
                            raw['ah'][k], True) for k in range(NHEADS)]
    xcat = jnp.concatenate(heads, axis=1)
    out = jax.nn.elu(_ref_gat_layer(xcat, adj, raw['Wo'], raw['Qo'],
                                    raw['Vo'], raw['ao'], False))
    return out.reshape(-1)


if __name__ == "__main__":
    key = jax.random.PRNGKey(0)
    kp, kx, ka = jax.random.split(key, 3)
    raw = init_params(kp)
    packed = pack_params(raw)

    x = jax.random.normal(kx, (N_NODES, NFEAT), jnp.float32)                 # (3, 6)
    adj = (jax.random.uniform(ka, (N_NODES, N_NODES)) > 0.4).astype(jnp.float32)
    adj = jnp.maximum(adj, jnp.eye(N_NODES, dtype=jnp.float32))              # self loops

    fwd = jax.jit(gat_regress_forward)
    out = fwd(packed, x, adj)
    jax.block_until_ready(out)

    ref = gat_regress_reference(raw, x, adj)
    assert out.shape == (N_NODES * NCLASS,)
    assert bool(jnp.allclose(out, ref, rtol=2e-2, atol=2e-2))
    print("KERNEL_OK")
</pallas_src>

<mosaic_0001>
module attributes {stable_mosaic.version = 11 : i64} {
  func.func @gat_regress_kernel(%arg0: memref<3x6xf32, #tpu.memory_space<vmem>>, %arg1: memref<3x3xf32, #tpu.memory_space<vmem>>, %arg2: memref<10x6x1xf32, #tpu.memory_space<vmem>>, %arg3: memref<10x1x6xf32, #tpu.memory_space<vmem>>, %arg4: memref<10x6x18xf32, #tpu.memory_space<vmem>>, %arg5: memref<10x18x8xf32, #tpu.memory_space<vmem>>, %arg6: memref<3x6xf32, #tpu.memory_space<vmem>>) attributes {dimension_semantics = [], scalar_prefetch = 0 : i64, scratch_operands = 0 : i64, tpu.core_type = #tpu.core_type<tc>} {
    %c0 = arith.constant 0 : index
    %c0_0 = arith.constant 0 : index
    %0 = vector.load %arg0[%c0, %c0_0] : memref<3x6xf32, #tpu.memory_space<vmem>>, vector<3x6xf32>
    %c0_1 = arith.constant 0 : index
    %c0_2 = arith.constant 0 : index
    %1 = vector.load %arg1[%c0_1, %c0_2] : memref<3x3xf32, #tpu.memory_space<vmem>>, vector<3x3xf32>
    %2 = vector.shape_cast %0 : vector<3x6xf32> to vector<1x3x6xf32>
    %3 = vector.shape_cast %2 : vector<1x3x6xf32> to vector<1x3x6xf32>
    %4 = vector.broadcast %3 : vector<1x3x6xf32> to vector<10x3x6xf32>
    %c0_3 = arith.constant 0 : index
    %c0_4 = arith.constant 0 : index
    %c0_5 = arith.constant 0 : index
    %5 = vector.load %arg2[%c0_3, %c0_4, %c0_5] : memref<10x6x1xf32, #tpu.memory_space<vmem>>, vector<10x6x1xf32>
    "tpu.trace_start"() <{level = 10 : i32, message = "hnf,hfo->hno"}> : () -> ()
    %cst = arith.constant dense<0.000000e+00> : vector<10x3x1xf32>
    %6 = tpu.matmul %4, %5, %cst {dimension_numbers = #tpu.dot_dimension_numbers<[2], [1], [1], [2], [0, 0, 0, 1, 1, 2], [0], [0]>} : vector<10x3x6xf32>, vector<10x6x1xf32>, vector<10x3x1xf32> -> vector<10x3x1xf32>
    "tpu.trace_stop"() : () -> ()
    %c0_6 = arith.constant 0 : index
    %c0_7 = arith.constant 0 : index
    %c0_8 = arith.constant 0 : index
    %7 = vector.load %arg3[%c0_6, %c0_7, %c0_8] : memref<10x1x6xf32, #tpu.memory_space<vmem>>, vector<10x1x6xf32>
    "tpu.trace_start"() <{level = 10 : i32, message = "hif,hjf->hij"}> : () -> ()
    %cst_9 = arith.constant dense<0.000000e+00> : vector<10x1x3xf32>
    %8 = tpu.matmul %7, %4, %cst_9 {dimension_numbers = #tpu.dot_dimension_numbers<[2], [2], [1], [1], [0, 0, 0, 1, 1, 1], [0], [0]>} : vector<10x1x6xf32>, vector<10x3x6xf32>, vector<10x1x3xf32> -> vector<10x1x3xf32>
    "tpu.trace_stop"() : () -> ()
    %9 = vector.broadcast %6 : vector<10x3x1xf32> to vector<10x3x3xf32>
    %10 = vector.broadcast %8 : vector<10x1x3xf32> to vector<10x3x3xf32>
    %11 = arith.addf %9, %10 : vector<10x3x3xf32>
    %cst_10 = arith.constant 0.000000e+00 : f32
    %12 = vector.broadcast %cst_10 : f32 to vector<10x3x3xf32>
    %13 = arith.cmpf ogt, %11, %12 : vector<10x3x3xf32>
    %cst_11 = arith.constant 1.000000e-01 : f32
    %14 = vector.broadcast %cst_11 : f32 to vector<10x3x3xf32>
    %15 = arith.mulf %14, %11 : vector<10x3x3xf32>
    %16 = arith.select %13, %11, %15 : vector<10x3x3xi1>, vector<10x3x3xf32>
    %17 = vector.shape_cast %1 : vector<3x3xf32> to vector<1x3x3xf32>
    %cst_12 = arith.constant 0.000000e+00 : f32
    %18 = vector.broadcast %cst_12 : f32 to vector<1x3x3xf32>
    %19 = arith.cmpf ogt, %17, %18 : vector<1x3x3xf32>
    %cst_13 = arith.constant -9.000000e+15 : f32
    %20 = vector.shape_cast %19 : vector<1x3x3xi1> to vector<1x3x3xi1>
    %21 = vector.broadcast %20 : vector<1x3x3xi1> to vector<10x3x3xi1>
    %22 = vector.broadcast %cst_13 : f32 to vector<10x3x3xf32>
    %23 = arith.select %21, %16, %22 : vector<10x3x3xi1>, vector<10x3x3xf32>
    %cst_14 = arith.constant dense<0xFF800000> : vector<10x3xf32>
    %24 = vector.multi_reduction <maximumf>, %23, %cst_14 [2] : vector<10x3x3xf32> to vector<10x3xf32>
    %25 = vector.shape_cast %24 : vector<10x3xf32> to vector<10x3x1xf32>
    %26 = vector.broadcast %25 : vector<10x3x1xf32> to vector<10x3x3xf32>
    %27 = arith.subf %23, %26 : vector<10x3x3xf32>
    %28 = math.exp %27 : vector<10x3x3xf32>
    %cst_15 = arith.constant dense<0.000000e+00> : vector<10x3xf32>
    %29 = vector.multi_reduction <add>, %28, %cst_15 [2] : vector<10x3x3xf32> to vector<10x3xf32>
    %30 = vector.shape_cast %29 : vector<10x3xf32> to vector<10x3x1xf32>
    %31 = tpu.reciprocal %30 {approx = true} : vector<10x3x1xf32> -> vector<10x3x1xf32>
    %32 = vector.broadcast %31 : vector<10x3x1xf32> to vector<10x3x3xf32>
    %33 = arith.mulf %28, %32 : vector<10x3x3xf32>
    %c0_16 = arith.constant 0 : index
    %c0_17 = arith.constant 0 : index
    %c0_18 = arith.constant 0 : index
    %34 = vector.load %arg4[%c0_16, %c0_17, %c0_18] : memref<10x6x18xf32, #tpu.memory_space<vmem>>, vector<10x6x18xf32>
    "tpu.trace_start"() <{level = 10 : i32, message = "hnf,hfd->hnd"}> : () -> ()
    %cst_19 = arith.constant dense<0.000000e+00> : vector<10x3x18xf32>
    %35 = tpu.matmul %4, %34, %cst_19 {dimension_numbers = #tpu.dot_dimension_numbers<[2], [1], [1], [2], [0, 0, 0, 1, 1, 2], [0], [0]>} : vector<10x3x6xf32>, vector<10x6x18xf32>, vector<10x3x18xf32> -> vector<10x3x18xf32>
    "tpu.trace_stop"() : () -> ()
    "tpu.trace_start"() <{level = 10 : i32, message = "hij,hjd->hid"}> : () -> ()
    %cst_20 = arith.constant dense<0.000000e+00> : vector<10x3x18xf32>
    %36 = tpu.matmul %33, %35, %cst_20 {dimension_numbers = #tpu.dot_dimension_numbers<[2], [1], [1], [2], [0, 0, 0, 1, 1, 2], [0], [0]>} : vector<10x3x3xf32>, vector<10x3x18xf32>, vector<10x3x18xf32> -> vector<10x3x18xf32>
    %cst_21 = arith.constant 0.000000e+00 : f32
    "tpu.trace_stop"() : () -> ()
    %37 = vector.broadcast %cst_21 : f32 to vector<10x3x18xf32>
    %38 = arith.cmpf ogt, %36, %37 : vector<10x3x18xf32>
    %cst_22 = arith.constant 0.000000e+00 : f32
    %39 = vector.broadcast %cst_22 : f32 to vector<10x3x18xf32>
    %40 = arith.minimumf %36, %39 : vector<10x3x18xf32>
    %41 = math.exp %40 : vector<10x3x18xf32>
    %cst_23 = arith.constant 1.000000e+00 : f32
    %42 = vector.broadcast %cst_23 : f32 to vector<10x3x18xf32>
    %43 = arith.subf %41, %42 : vector<10x3x18xf32>
    %44 = arith.select %38, %36, %43 : vector<10x3x18xi1>, vector<10x3x18xf32>
    %c0_24 = arith.constant 0 : index
    %c0_25 = arith.constant 0 : index
    %c0_26 = arith.constant 0 : index
    %45 = vector.load %arg5[%c0_24, %c0_25, %c0_26] : memref<10x18x8xf32, #tpu.memory_space<vmem>>, vector<10x18x8xf32>
    "tpu.trace_start"() <{level = 10 : i32, message = "hnd,hdo->hno"}> : () -> ()
    %cst_27 = arith.constant dense<0.000000e+00> : vector<10x3x8xf32>
    %46 = tpu.matmul %44, %45, %cst_27 {dimension_numbers = #tpu.dot_dimension_numbers<[2], [1], [1], [2], [0, 0, 0, 1, 1, 2], [0], [0]>} : vector<10x3x18xf32>, vector<10x18x8xf32>, vector<10x3x8xf32> -> vector<10x3x8xf32>
    "tpu.trace_stop"() : () -> ()
    %cst_28 = arith.constant dense<0.000000e+00> : vector<3x8xf32>
    %47 = vector.multi_reduction <add>, %46, %cst_28 [0] : vector<10x3x8xf32> to vector<3x8xf32>
    %48 = vector.extract_strided_slice %47 {offsets = [0, 0], sizes = [3, 1], strides = [1, 1]} : vector<3x8xf32> to vector<3x1xf32>
    %49 = vector.extract_strided_slice %47 {offsets = [0, 1], sizes = [3, 1], strides = [1, 1]} : vector<3x8xf32> to vector<3x1xf32>
    %50 = vector.extract_strided_slice %47 {offsets = [0, 2], sizes = [3, 6], strides = [1, 1]} : vector<3x8xf32> to vector<3x6xf32>
    %51 = tpu.transpose %49, [1, 0] : vector<3x1xf32> -> vector<1x3xf32>
    %52 = vector.broadcast %48 : vector<3x1xf32> to vector<3x3xf32>
    %53 = vector.broadcast %51 : vector<1x3xf32> to vector<3x3xf32>
    %54 = arith.addf %52, %53 : vector<3x3xf32>
    %cst_29 = arith.constant 0.000000e+00 : f32
    %55 = vector.broadcast %cst_29 : f32 to vector<3x3xf32>
    %56 = arith.cmpf ogt, %54, %55 : vector<3x3xf32>
    %cst_30 = arith.constant 1.000000e-01 : f32
    %57 = vector.broadcast %cst_30 : f32 to vector<3x3xf32>
    %58 = arith.mulf %57, %54 : vector<3x3xf32>
    %59 = arith.select %56, %54, %58 : vector<3x3xi1>, vector<3x3xf32>
    %cst_31 = arith.constant 0.000000e+00 : f32
    %60 = vector.broadcast %cst_31 : f32 to vector<3x3xf32>
    %61 = arith.cmpf ogt, %1, %60 : vector<3x3xf32>
    %cst_32 = arith.constant -9.000000e+15 : f32
    %62 = vector.broadcast %cst_32 : f32 to vector<3x3xf32>
    %63 = arith.select %61, %59, %62 : vector<3x3xi1>, vector<3x3xf32>
    %cst_33 = arith.constant dense<0xFF800000> : vector<3xf32>
    %64 = vector.multi_reduction <maximumf>, %63, %cst_33 [1] : vector<3x3xf32> to vector<3xf32>
    %65 = vector.shape_cast %64 : vector<3xf32> to vector<3x1xf32>
    %66 = vector.broadcast %65 : vector<3x1xf32> to vector<3x3xf32>
    %67 = arith.subf %63, %66 : vector<3x3xf32>
    %68 = math.exp %67 : vector<3x3xf32>
    %cst_34 = arith.constant dense<0.000000e+00> : vector<3xf32>
    %69 = vector.multi_reduction <add>, %68, %cst_34 [1] : vector<3x3xf32> to vector<3xf32>
    %70 = vector.shape_cast %69 : vector<3xf32> to vector<3x1xf32>
    %71 = tpu.reciprocal %70 {approx = true} : vector<3x1xf32> -> vector<3x1xf32>
    %72 = vector.broadcast %71 : vector<3x1xf32> to vector<3x3xf32>
    %73 = arith.mulf %68, %72 : vector<3x3xf32>
    %cst_35 = arith.constant dense<0.000000e+00> : vector<3x6xf32>
    %74 = tpu.matmul %73, %50, %cst_35 {dimension_numbers = #tpu.dot_dimension_numbers<[1], [0], [0], [1], [0, 0, 1, 1], [], []>} : vector<3x3xf32>, vector<3x6xf32>, vector<3x6xf32> -> vector<3x6xf32>
    %cst_36 = arith.constant 0.000000e+00 : f32
    %75 = vector.broadcast %cst_36 : f32 to vector<3x6xf32>
    %76 = arith.cmpf ogt, %74, %75 : vector<3x6xf32>
    %cst_37 = arith.constant 0.000000e+00 : f32
    %77 = vector.broadcast %cst_37 : f32 to vector<3x6xf32>
    %78 = arith.minimumf %74, %77 : vector<3x6xf32>
    %79 = math.exp %78 : vector<3x6xf32>
    %cst_38 = arith.constant 1.000000e+00 : f32
    %80 = vector.broadcast %cst_38 : f32 to vector<3x6xf32>
    %81 = arith.subf %79, %80 : vector<3x6xf32>
    %82 = arith.select %76, %74, %81 : vector<3x6xi1>, vector<3x6xf32>
    %c0_39 = arith.constant 0 : index
    %c0_40 = arith.constant 0 : index
    %83 = vector.load %arg6[%c0_39, %c0_40] : memref<3x6xf32, #tpu.memory_space<vmem>>, vector<3x6xf32>
    tpu.vector_store %arg6[%c0_39, %c0_40], %82 {strides = array<i32>} : memref<3x6xf32, #tpu.memory_space<vmem>>, vector<3x6xf32>,
    return
  }
}

</mosaic_0001>

<bundles_post_ra>
// kernel: gat_regress_forward.1
= control target key start
LH: loop header
LB: loop body
LE: loop exit
PB: predicated region body
PF: predicated region fallthrough
CT: control target
= control target key end

     0   :  { %vm39_vm0 = vcmask 1045504   ;;  %vm35_vm1 = vcmask 48128   ;;  %v4890_v0 = vmov 0.0   ;;  %vm4891_vm2 = vmmov 0   ;;  %s4894_s7 = smov 126   ;;  %s5622_s2 = inlined_call_operand.vmem [shape: f32[10,6,1], index: 2, kind: input, shape index: {}]   ;;  %s5623_s0 = inlined_call_operand.vmem [shape: f32[3,6], index: 0, kind: input, shape index: {}]   ;;  %s5624_s3 = inlined_call_operand.vmem [shape: f32[10,1,6], index: 3, kind: input, shape index: {}]   ;;  %s5625_s4 = inlined_call_operand.vmem [shape: f32[10,6,18], index: 4, kind: input, shape index: {}]   ;;  %s5626_s1 = inlined_call_operand.vmem [shape: f32[3,3], index: 1, kind: input, shape index: {}]   ;;  %s5627_s5 = inlined_call_operand.vmem [shape: f32[10,18,8], index: 5, kind: input, shape index: {}]   ;;  %s5628_s6 = inlined_call_operand.vmem [shape: f32[3,6], index: 6, kind: output, shape index: {}]  }
   0x1   :  { %4522 = vmatprep.subr.mxu0 %v4890_v0  ;;  %v25_v1 = vld [vmem:[%s5622_s2] sm:$0x3f]  ;;  %4524 = vmatprep.mubr.msk.f32.mxu0 %vm4891_vm2, %v4890_v0  ;;  %v26_v3 = vld [vmem:[%s5622_s2 + $0x8] sm:$0x3f]  ;;  %v27_v4 = vld [vmem:[%s5622_s2 + $0x10] sm:$0x3f] }
   0x2   :  { %v4939_v2 = vld [vmem:[%s5623_s0] sm:$0x7]  ;;  %4523 = vmatpush3.msk.msra.mxu0 %vm39_vm0, %v25_v1  ;;  %4527 = vmatprep.subr.mxu1 %v4890_v0  ;;  %v28_v5 = vld [vmem:[%s5622_s2 + $0x18] sm:$0x3f]  ;;  %v30_v7 = vld [vmem:[%s5622_s2 + $0x28] sm:$0x3f] }
   0x3   :  { %4525 = vmatmul.mubr.msk.f32.vlgmr.msra.gmra.mxu0 %vm35_vm1, %v4939_v2  ;;  %4528 = vmatpush3.msk.msra.mxu1 %vm39_vm0, %v26_v3  ;;  %v29_v6 = vld [vmem:[%s5622_s2 + $0x20] sm:$0x3f]  ;;  %v31_v8 = vld [vmem:[%s5622_s2 + $0x30] sm:$0x3f]  ;;  %v32_v9 = vld [vmem:[%s5622_s2 + $0x38] sm:$0x3f] }
   0x4   :  { %4529 = vmatprep.mubr.msk.f32.mxu1 %vm4891_vm2, %v4890_v0  ;;  %4532 = vmatprep.subr.mxu0 %v4890_v0  ;;  %v33_v10 = vld [vmem:[%s5622_s2 + $0x40] sm:$0x3f]  ;;  %v34_v11 = vld [vmem:[%s5622_s2 + $0x48] sm:$0x3f]  ;;  %v776_v18 = vld [vmem:[%s5624_s3 + $0x6] sm:$0x1] }
   0x5   :  { %4530 = vmatmul.mubr.msk.f32.vlgmr.msra.gmra.mxu1 %vm35_vm1, %v4939_v2  ;;  %4533 = vmatpush3.msk.msra.mxu0 %vm39_vm0, %v27_v4  ;;  %v770_v12 = vld [vmem:[%s5624_s3] sm:$0x1]  ;;  %v771_v13 = vld [vmem:[%s5624_s3 + $0x1] sm:$0x1]  ;;  %v772_v14 = vld [vmem:[%s5624_s3 + $0x2] sm:$0x1] }
   0x6   :  { %4534 = vmatprep.mubr.msk.f32.mxu0 %vm4891_vm2, %v4890_v0  ;;  %4537 = vmatprep.subr.mxu1 %v4890_v0  ;;  %v773_v15 = vld [vmem:[%s5624_s3 + $0x3] sm:$0x1]  ;;  %v774_v16 = vld [vmem:[%s5624_s3 + $0x4] sm:$0x1]  ;;  %v775_v17 = vld [vmem:[%s5624_s3 + $0x5] sm:$0x1] }
   0x7   :  { %4535 = vmatmul.mubr.msk.f32.vlgmr.msra.gmra.mxu0 %vm35_vm1, %v4939_v2  ;;  %4538 = vmatpush3.msk.msra.mxu1 %vm39_vm0, %v28_v5  ;;  %v777_v19 = vld [vmem:[%s5624_s3 + $0x7] sm:$0x1]  ;;  %v778_v20 = vld [vmem:[%s5624_s3 + $0x8] sm:$0x1]  ;;  %v779_v21 = vld [vmem:[%s5624_s3 + $0x9] sm:$0x1] }
   0x8   :  { %4542 = vmatprep.subr.mxu0 %v4890_v0  ;;  %4539 = vmatprep.mubr.msk.f32.mxu1 %vm4891_vm2, %v4890_v0  ;;  %v4892_v22 = vmov 0   ;;  %v1764_v48 = vld [vmem:[%s5625_s4] sm:$0x3f]  ;;  %v1765_v49 = vld [vmem:[%s5625_s4 + $0x8] sm:$0x3f]  ;;  %vm1653_vm5 = vcmask 18432  }
   0x9   :  { %4543 = vmatpush3.msk.msra.mxu0 %vm39_vm0, %v29_v6  ;;  %4544 = vmatprep.mubr.msk.f32.mxu0 %vm4891_vm2, %v4890_v0  ;;  %v1766_v50 = vld [vmem:[%s5625_s4 + $0x10] sm:$0x3f]  ;;  %v1767_v53 = vld [vmem:[%s5625_s4 + $0x18] sm:$0x3f]  ;;  %v1768_v56 = vld [vmem:[%s5625_s4 + $0x20] sm:$0x3f] }
   0xa   :  { %4540 = vmatmul.mubr.msk.f32.vlgmr.msra.gmra.mxu1 %vm35_vm1, %v4939_v2  ;;  %4547 = vmatprep.subr.mxu1 %v4890_v0  ;;  %v1769_v59 = vld [vmem:[%s5625_s4 + $0x28] sm:$0x3f]  ;;  %v1770_v62 = vld [vmem:[%s5625_s4 + $0x30] sm:$0x3f]  ;;  %v1771_v3 = vld [vmem:[%s5625_s4 + $0x38] sm:$0x3f] }
   0xb   :  { %4545 = vmatmul.mubr.msk.f32.vlgmr.msra.gmra.mxu0 %vm35_vm1, %v4939_v2  ;;  %4552 = vmatprep.subr.mxu0 %v4890_v0  ;;  %v1772_v6 = vld [vmem:[%s5625_s4 + $0x40] sm:$0x3f]  ;;  %vm2508_vm15 = vcmask 1042432  }
   0xc   :  { %4548 = vmatpush3.msk.msra.mxu1 %vm39_vm0, %v30_v7  ;;  %4549 = vmatprep.mubr.msk.f32.mxu1 %vm4891_vm2, %v4890_v0 }
   0xd   :  { %4553 = vmatpush3.msk.msra.mxu0 %vm39_vm0, %v31_v8  ;;  %4554 = vmatprep.mubr.msk.f32.mxu0 %vm4891_vm2, %v4890_v0 }
   0xe   :  { %4550 = vmatmul.mubr.msk.f32.vlgmr.msra.gmra.mxu1 %vm35_vm1, %v4939_v2  ;;  %4557 = vmatprep.subr.mxu1 %v4890_v0 }
   0xf   :  { %4555 = vmatmul.mubr.msk.f32.vlgmr.msra.gmra.mxu0 %vm35_vm1, %v4939_v2  ;;  %4562 = vmatprep.subr.mxu0 %v4890_v0 }
  0x10   :  { %4558 = vmatpush3.msk.msra.mxu1 %vm39_vm0, %v32_v9  ;;  %4559 = vmatprep.mubr.msk.f32.mxu1 %vm4891_vm2, %v4890_v0  ;;  %v1773_v9 = vld [vmem:[%s5625_s4 + $0x48] sm:$0x3f] }
  0x11   :  { %4563 = vmatpush3.msk.msra.mxu0 %vm39_vm0, %v33_v10  ;;  %4564 = vmatprep.mubr.msk.f32.mxu0 %vm4891_vm2, %v4890_v0 }
  0x12   :  { %4560 = vmatmul.mubr.msk.f32.vlgmr.msra.gmra.mxu1 %vm35_vm1, %v4939_v2  ;;  %4567 = vmatprep.subr.mxu1 %v4890_v0 }
  0x13   :  { %4565 = vmatmul.mubr.msk.f32.vlgmr.msra.gmra.mxu0 %vm35_vm1, %v4939_v2  ;;  %4568 = vmatpush3.msk.msra.mxu1 %vm39_vm0, %v34_v11  ;;  %v1560_v11 = vlaneseq }
  0x14   :  { %4569 = vmatprep.mubr.msk.f32.mxu1 %vm4891_vm2, %v4890_v0  ;;  %4572 = vmatprep.subr.mxu0 %v4890_v0 }
  0x15   :  { %4573 = vmatpush3.xpose.msk.msra.mxu0 %vm35_vm1, %v4939_v2  ;;  %4577 = vmatprep.subr.mxu1 %v4890_v0 }
  0x16   :  { %4570 = vmatmul.mubr.msk.f32.vlgmr.msra.gmra.mxu1 %vm35_vm1, %v4939_v2  ;;  %4574 = vmatprep.mubr.msk.f32.mxu0 %vm4891_vm2, %v4890_v0 }
  0x17   :  { %4578 = vmatpush3.xpose.msk.msra.mxu1 %vm35_vm1, %v4939_v2  ;;  %4582 = vmatprep.subr.mxu0 %v4890_v0 }
  0x18   :  { %4575 = vmatmul.mubr.msk.f32.vlgmr.msra.gmra.mxu0 %vm35_vm1, %v770_v12  ;;  %4579 = vmatprep.mubr.msk.f32.mxu1 %vm4891_vm2, %v4890_v0  ;;  %v1561_v12 = vshrl.u32 %v1560_v11, 7 }
  0x19   :  { %4583 = vmatpush3.xpose.msk.msra.mxu0 %vm35_vm1, %v4939_v2  ;;  %4584 = vmatprep.mubr.msk.f32.mxu0 %vm4891_vm2, %v4890_v0 }
  0x1a   :  { %4580 = vmatmul.mubr.msk.f32.vlgmr.msra.gmra.mxu1 %vm35_vm1, %v771_v13  ;;  %4587 = vmatprep.subr.mxu1 %v4890_v0  ;;  %v5231_v13 = vsub.s32 0, %v1561_v12 }
  0x1b   :  { %4592 = vmatprep.subr.mxu0 %v4890_v0  ;;  %4588 = vmatpush3.xpose.msk.msra.mxu1 %vm35_vm1, %v4939_v2 }
  0x1c   :  { %4585 = vmatmul.mubr.msk.f32.vlgmr.msra.gmra.mxu0 %vm35_vm1, %v772_v14  ;;  %4589 = vmatprep.mubr.msk.f32.mxu1 %vm4891_vm2, %v4890_v0 }
  0x1d   :  { %4593 = vmatpush3.xpose.msk.msra.mxu0 %vm35_vm1, %v4939_v2  ;;  %4594 = vmatprep.mubr.msk.f32.mxu0 %vm4891_vm2, %v4890_v0 }
  0x1e   :  { %4590 = vmatmul.mubr.msk.f32.vlgmr.msra.gmra.mxu1 %vm35_vm1, %v773_v15  ;;  %4597 = vmatprep.subr.mxu1 %v4890_v0 }
  0x1f   :  { %4602 = vmatprep.subr.mxu0 %v4890_v0  ;;  %4598 = vmatpush3.xpose.msk.msra.mxu1 %vm35_vm1, %v4939_v2 }
  0x20   :  { %4595 = vmatmul.mubr.msk.f32.vlgmr.msra.gmra.mxu0 %vm35_vm1, %v774_v16  ;;  %4599 = vmatprep.mubr.msk.f32.mxu1 %vm4891_vm2, %v4890_v0  ;;  %v5238_v16 = vld [vmem:[%s5626_s1] sm:$0x7] }
  0x21   :  { %4603 = vmatpush3.xpose.msk.msra.mxu0 %vm35_vm1, %v4939_v2  ;;  %4604 = vmatprep.mubr.msk.f32.mxu0 %vm4891_vm2, %v4890_v0  ;;  %vm1640_vm4 = vcmp.gt.f32.partialorder %v5238_v16, 0.0 }
  0x22   :  { %4600 = vmatmul.mubr.msk.f32.vlgmr.msra.gmra.mxu1 %vm35_vm1, %v775_v17  ;;  %4607 = vmatprep.subr.mxu1 %v4890_v0 }
  0x23   :  { %4612 = vmatprep.subr.mxu0 %v4890_v0  ;;  %4608 = vmatpush3.xpose.msk.msra.mxu1 %vm35_vm1, %v4939_v2 }
  0x24   :  { %4605 = vmatmul.mubr.msk.f32.vlgmr.msra.gmra.mxu0 %vm35_vm1, %v776_v18  ;;  %4609 = vmatprep.mubr.msk.f32.mxu1 %vm4891_vm2, %v4890_v0 }
  0x25   :  { %4613 = vmatpush3.xpose.msk.msra.mxu0 %vm35_vm1, %v4939_v2  ;;  %4614 = vmatprep.mubr.msk.f32.mxu0 %vm4891_vm2, %v4890_v0 }
  0x26   :  { %4610 = vmatmul.mubr.msk.f32.vlgmr.msra.gmra.mxu1 %vm35_vm1, %v777_v19  ;;  %4617 = vmatprep.subr.mxu1 %v4890_v0 }
  0x27   :  { %4618 = vmatpush3.xpose.msk.msra.mxu1 %vm35_vm1, %v4939_v2  ;;  %4619 = vmatprep.mubr.msk.f32.mxu1 %vm4891_vm2, %v4890_v0 }
  0x28   :  { %4615 = vmatmul.mubr.msk.f32.vlgmr.msra.gmra.mxu0 %vm35_vm1, %v778_v20  ;;  %4822 = vset.pattern.permute.xlu0 %v4892_v22 }
  0x29   :  { %4823 = vset.pattern.permute.xlu1 %v4892_v22  ;;  %4622 = vmatprep.subr.mxu0 %v4890_v0 }
  0x2a   :  { %4620 = vmatmul.mubr.msk.f32.vlgmr.msra.gmra.mxu1 %vm35_vm1, %v779_v21  ;;  %4624 = vmatprep.mubr.msk.f32.mxu0 %vm4891_vm2, %v4890_v0 }
  0x2b   :  { %4627 = vmatprep.subr.mxu1 %v4890_v0  ;;  %4629 = vmatprep.mubr.msk.f32.mxu1 %vm4891_vm2, %v4890_v0 }
  0x2c   :  { %4623 = vmatpush3.msk.msra.mxu0 %vm39_vm0, %v1764_v48  ;;  %4628 = vmatpush3.msk.msra.mxu1 %vm39_vm0, %v1765_v49 }
  0x2d   :  { %4625 = vmatmul.mubr.msk.f32.vlgmr.msra.gmra.mxu0 %vm35_vm1, %v4939_v2  ;;  %4632 = vmatprep.subr.mxu0 %v4890_v0 }
  0x2e   :  { %4630 = vmatmul.mubr.msk.f32.vlgmr.msra.gmra.mxu1 %vm35_vm1, %v4939_v2  ;;  %4634 = vmatprep.mubr.msk.f32.mxu0 %vm4891_vm2, %v4890_v0 }
  0x2f   :  { %4633 = vmatpush3.msk.msra.mxu0 %vm39_vm0, %v1766_v50  ;;  %4637 = vmatprep.subr.mxu1 %v4890_v0 }
  0x30   :  { %4638 = vmatpush3.msk.msra.mxu1 %vm39_vm0, %v1767_v53  ;;  %4639 = vmatprep.mubr.msk.f32.mxu1 %vm4891_vm2, %v4890_v0 }
  0x31   :  { %4635 = vmatmul.mubr.msk.f32.vlgmr.msra.gmra.mxu0 %vm35_vm1, %v4939_v2  ;;  %4642 = vmatprep.subr.mxu0 %v4890_v0 }
  0x32   :  { %4640 = vmatmul.mubr.msk.f32.vlgmr.msra.gmra.mxu1 %vm35_vm1, %v4939_v2  ;;  %4644 = vmatprep.mubr.msk.f32.mxu0 %vm4891_vm2, %v4890_v0 }
  0x33   :  { %4643 = vmatpush3.msk.msra.mxu0 %vm39_vm0, %v1768_v56  ;;  %4647 = vmatprep.subr.mxu1 %v4890_v0 }
  0x34   :  { %4648 = vmatpush3.msk.msra.mxu1 %vm39_vm0, %v1769_v59  ;;  %4649 = vmatprep.mubr.msk.f32.mxu1 %vm4891_vm2, %v4890_v0 }
  0x35   :  { %4645 = vmatmul.mubr.msk.f32.vlgmr.msra.gmra.mxu0 %vm35_vm1, %v4939_v2  ;;  %4652 = vmatprep.subr.mxu0 %v4890_v0 }
  0x36   :  { %4650 = vmatmul.mubr.msk.f32.vlgmr.msra.gmra.mxu1 %vm35_vm1, %v4939_v2  ;;  %4653 = vmatpush3.msk.msra.mxu0 %vm39_vm0, %v1770_v62 }
  0x37   :  { %4654 = vmatprep.mubr.msk.f32.mxu0 %vm4891_vm2, %v4890_v0  ;;  %4657 = vmatprep.subr.mxu1 %v4890_v0 }
  0x38   :  { %4662 = vmatprep.subr.mxu0 %v4890_v0  ;;  %4658 = vmatpush3.msk.msra.mxu1 %vm39_vm0, %v1771_v3 }
  0x39   :  { %4655 = vmatmul.mubr.msk.f32.vlgmr.msra.gmra.mxu0 %vm35_vm1, %v4939_v2  ;;  %4659 = vmatprep.mubr.msk.f32.mxu1 %vm4891_vm2, %v4890_v0 }
  0x3a   :  { %4663 = vmatpush3.msk.msra.mxu0 %vm39_vm0, %v1772_v6  ;;  %4664 = vmatprep.mubr.msk.f32.mxu0 %vm4891_vm2, %v4890_v0 }
  0x3b   :  { %4660 = vmatmul.mubr.msk.f32.vlgmr.msra.gmra.mxu1 %vm35_vm1, %v4939_v2  ;;  %4667 = vmatprep.subr.mxu1 %v4890_v0 }
  0x3c   :  { %4668 = vmatpush3.msk.msra.mxu1 %vm39_vm0, %v1773_v9  ;;  %4669 = vmatprep.mubr.msk.f32.mxu1 %vm4891_vm2, %v4890_v0  ;;  %vm2504_vm0 = vcmask 23552  }
  0x3d   :  { %4665 = vmatmul.mubr.msk.f32.vlgmr.msra.gmra.mxu0 %vm35_vm1, %v4939_v2  ;;  %4672 = vmatprep.subr.mxu0 %v4890_v0 }
  0x3e   :  { %4674 = vmatprep.mubr.msk.f32.mxu0 %vm4891_vm2, %v4890_v0  ;;  %4677 = vmatprep.subr.mxu1 %v4890_v0 }
  0x3f   :  { %4670 = vmatmul.mubr.msk.f32.vlgmr.msra.gmra.mxu1 %vm35_vm1, %v4939_v2  ;;  %vm3360_vm1 = vcmask 1041408  }
  0x40   :  { %4679 = vmatprep.mubr.msk.f32.mxu1 %vm4891_vm2, %v4890_v0 }
  0xc3   :  { %v109_v23 = vpop.f32.mrf.mxu0 }
  0xc4   :  { %1512 = vperm.xlu0 %4822, %v109_v23  }
  0xc5   :  { %v4526_v24 = vpop.f32.mrf.mxu0  ;;  %v182_v25 = vpop.f32.mrf.mxu1 }
  0xc7   :  { %v4531_v26 = vpop.f32.mrf.mxu1  ;;  %v255_v27 = vpop.f32.mrf.mxu0 }
  0xc8   :  { %1517 = vperm.xlu0 %4822, %v182_v25   ;;  %1522 = vperm.xlu1 %4823, %v255_v27  }
  0xc9   :  { %v4536_v28 = vpop.f32.mrf.mxu0 }
  0xca   :  { %v328_v29 = vpop.f32.mrf.mxu1 }
  0xcb   :  { %v401_v30 = vpop.f32.mrf.mxu0 }
  0xcc   :  { %1527 = vperm.xlu1 %4823, %v328_v29   ;;  %1532 = vperm.xlu0 %4822, %v401_v30   ;;  %v4541_v31 = vpop.f32.mrf.mxu1 }
  0xcd   :  { %v4546_v32 = vpop.f32.mrf.mxu0 }
  0xce   :  { %v474_v33 = vpop.f32.mrf.mxu1 }
  0xcf   :  { %v547_v34 = vpop.f32.mrf.mxu0 }
  0xd0   :  { %1537 = vperm.xlu1 %4823, %v474_v33   ;;  %1542 = vperm.xlu0 %4822, %v547_v34   ;;  %v4551_v35 = vpop.f32.mrf.mxu1 }
  0xd1   :  { %v4556_v36 = vpop.f32.mrf.mxu0 }
  0xd2   :  { %v620_v37 = vpop.f32.mrf.mxu1 }
  0xd3   :  { %v693_v38 = vpop.f32.mrf.mxu0 }
  0xd4   :  { %1547 = vperm.xlu1 %4823, %v620_v37   ;;  %1552 = vperm.xlu0 %4822, %v693_v38   ;;  %v4561_v39 = vpop.f32.mrf.mxu1 }
  0xd5   :  { %v4566_v40 = vpop.f32.mrf.mxu0 }
  0xd6   :  { %v766_v41 = vpop.f32.mrf.mxu1 }
  0xd8   :  { %1557 = vperm.xlu1 %4823, %v766_v41   ;;  %v4571_v42 = vpop.f32.mrf.mxu1  ;;  %v5121_v43 = vpop.f32.mrf.mxu0 }
  0xd9   :  { %v1563_v14 = vrot.slane %v5121_v43, %v5231_v13 }
  0xda   :  { %v5123_v44 = vpop.f32.mrf.mxu1  ;;  %v4576_v45 = vpop.f32.mrf.mxu0 }
  0xdb   :  { %v1567_v17 = vrot.slane %v5123_v44, %v5231_v13 }
  0xdc   :  { %v4581_v46 = vpop.f32.mrf.mxu1  ;;  %v5125_v47 = vpop.f32.mrf.mxu0 }
  0xdd   :  { %v1571_v18 = vrot.slane %v5125_v47, %v5231_v13 }
  0xde   :  { %v4586_v51 = vpop.f32.mrf.mxu0  ;;  %v5138_v52 = vpop.f32.mrf.mxu1 }
  0xdf   :  { %v1575_v22 = vrot.slane %v5138_v52, %v5231_v13 }
  0xe0   :  { %v5150_v54 = vpop.f32.mrf.mxu0  ;;  %v4591_v55 = vpop.f32.mrf.mxu1 }
  0xe1   :  { %v1579_v25 = vrot.slane %v5150_v54, %v5231_v13 }
  0xe2   :  { %v4596_v57 = vpop.f32.mrf.mxu0  ;;  %v5160_v58 = vpop.f32.mrf.mxu1 }
  0xe3   :  { %v1583_v33 = vrot.slane %v5160_v58, %v5231_v13 }
  0xe4   :  { %v5172_v60 = vpop.f32.mrf.mxu0  ;;  %v4601_v61 = vpop.f32.mrf.mxu1 }
  0xe5   :  { %v1587_v34 = vrot.slane %v5172_v60, %v5231_v13 }
  0xe6   :  { %v4606_v63 = vpop.f32.mrf.mxu0  ;;  %v5182_v1 = vpop.f32.mrf.mxu1 }
  0xe7   :  { %v1591_v47 = vrot.slane %v5182_v1, %v5231_v13 }
  0xe8   :  { %v5193_v4 = vpop.f32.mrf.mxu0  ;;  %v4611_v5 = vpop.f32.mrf.mxu1 }
  0xe9   :  { %v1595_v48 = vrot.slane %v5193_v4, %v5231_v13 }
  0xea   :  { %v5203_v7 = vpop.f32.mrf.mxu1  ;;  %v4616_v8 = vpop.f32.mrf.mxu0 }
  0xeb   :  { %v1599_v61 = vrot.slane %v5203_v7, %v5231_v13 }
  0xec   :  { %v4621_v10 = vpop.f32.mrf.mxu1 }
 0x13f   :  { %v1513_v15 = vpop.permute.xlu0 %1512 }
 0x140   :  { %v1600_v2 = vadd.f32 %v1563_v14, %v1513_v15 }
 0x142   :  { %v1620_v19 = vmul.f32 0.1, %v1600_v2  ;;  %vm1610_vm3 = vcmp.gt.f32.partialorder %v1600_v2, 0.0 }
 0x143   :  { %v1518_v20 = vpop.permute.xlu0 %1517  ;;  %v1523_v21 = vpop.permute.xlu1 %1522 }
 0x144   :  { %v1601_v23 = vadd.f32 %v1567_v17, %v1518_v20  ;;  %v1602_v24 = vadd.f32 %v1571_v18, %v1523_v21  ;;  %v1630_v26 = vsel %vm1610_vm3, %v1600_v2, %v1620_v19  ;;  %vm3356_vm3 = vcmask 146432  }
 0x145   :  { %v5251_v27 = vsel %vm1640_vm4, %v1630_v26, -9e+15 }
 0x146   :  { %v1621_v28 = vmul.f32 0.1, %v1601_v23  ;;  %v1622_v29 = vmul.f32 0.1, %v1602_v24  ;;  %v1654_v30 = vsel %vm1653_vm5, %v5251_v27, -inf  ;;  %vm1611_vm6 = vcmp.gt.f32.partialorder %v1601_v23, 0.0 }
 0x147   :  { %v1528_v31 = vpop.permute.xlu1 %1527  ;;  %v1533_v32 = vpop.permute.xlu0 %1532  ;;  %1655 = vmax.xlane.f32.xlu0 %v1654_v30  ;;  %vm1612_vm7 = vcmp.gt.f32.partialorder %v1602_v24, 0.0 }
 0x148   :  { %v1603_v35 = vadd.f32 %v1575_v22, %v1528_v31  ;;  %v1604_v36 = vadd.f32 %v1579_v25, %v1533_v32  ;;  %v1631_v37 = vsel %vm1611_vm6, %v1601_v23, %v1621_v28  ;;  %v1632_v38 = vsel %vm1612_vm7, %v1602_v24, %v1622_v29 }
 0x149   :  { %v5261_v39 = vsel %vm1640_vm4, %v1631_v37, -9e+15  ;;  %v5265_v40 = vsel %vm1640_vm4, %v1632_v38, -9e+15 }
 0x14a   :  { %v1623_v41 = vmul.f32 0.1, %v1603_v35  ;;  %v1624_v42 = vmul.f32 0.1, %v1604_v36  ;;  %v1657_v43 = vsel %vm1653_vm5, %v5261_v39, -inf  ;;  %v1660_v44 = vsel %vm1653_vm5, %v5265_v40, -inf }
 0x14b   :  { %1658 = vmax.xlane.f32.xlu1 %v1657_v43  ;;  %v1538_v45 = vpop.permute.xlu1 %1537  ;;  %v1543_v46 = vpop.permute.xlu0 %1542  ;;  %1661 = vmax.xlane.f32.xlu0 %v1660_v44  ;;  %vm1613_vm8 = vcmp.gt.f32.partialorder %v1603_v35, 0.0  ;;  %vm1614_vm9 = vcmp.gt.f32.partialorder %v1604_v36, 0.0 }
 0x14c   :  { %v1605_v49 = vadd.f32 %v1583_v33, %v1538_v45  ;;  %v1606_v50 = vadd.f32 %v1587_v34, %v1543_v46  ;;  %v1633_v51 = vsel %vm1613_vm8, %v1603_v35, %v1623_v41  ;;  %v1634_v52 = vsel %vm1614_vm9, %v1604_v36, %v1624_v42 }
 0x14d   :  { %v1646_v53 = vsel %vm1640_vm4, %v1633_v51, -9e+15  ;;  %v1647_v54 = vsel %vm1640_vm4, %v1634_v52, -9e+15 }
 0x14e   :  { %v1625_v55 = vmul.f32 0.1, %v1605_v49  ;;  %v1626_v56 = vmul.f32 0.1, %v1606_v50  ;;  %v1663_v57 = vsel %vm1653_vm5, %v1646_v53, -inf  ;;  %v1666_v58 = vsel %vm1653_vm5, %v1647_v54, -inf }
 0x14f   :  { %v1548_v59 = vpop.permute.xlu1 %1547  ;;  %v1553_v60 = vpop.permute.xlu0 %1552  ;;  %1664 = vmax.xlane.f32.xlu0 %v1663_v57  ;;  %1667 = vmax.xlane.f32.xlu1 %v1666_v58  ;;  %vm1615_vm10 = vcmp.gt.f32.partialorder %v1605_v49, 0.0  ;;  %vm1616_vm11 = vcmp.gt.f32.partialorder %v1606_v50, 0.0 }
 0x150   :  { %v1607_v62 = vadd.f32 %v1591_v47, %v1548_v59  ;;  %v1608_v63 = vadd.f32 %v1595_v48, %v1553_v60  ;;  %v1635_v1 = vsel %vm1615_vm10, %v1605_v49, %v1625_v55  ;;  %v1636_v3 = vsel %vm1616_vm11, %v1606_v50, %v1626_v56 }
 0x151   :  { %v1648_v4 = vsel %vm1640_vm4, %v1635_v1, -9e+15  ;;  %v1649_v5 = vsel %vm1640_vm4, %v1636_v3, -9e+15 }
 0x152   :  { %v1627_v6 = vmul.f32 0.1, %v1607_v62  ;;  %v1628_v8 = vmul.f32 0.1, %v1608_v63  ;;  %v1669_v9 = vsel %vm1653_vm5, %v1648_v4, -inf  ;;  %v1672_v10 = vsel %vm1653_vm5, %v1649_v5, -inf }
 0x153   :  { %v1558_v11 = vpop.permute.xlu1 %1557  ;;  %1670 = vmax.xlane.f32.xlu0 %v1669_v9  ;;  %1673 = vmax.xlane.f32.xlu1 %v1672_v10  ;;  %vm1617_vm12 = vcmp.gt.f32.partialorder %v1607_v62, 0.0  ;;  %vm1618_vm13 = vcmp.gt.f32.partialorder %v1608_v63, 0.0 }
 0x154   :  { %v1609_v7 = vadd.f32 %v1599_v61, %v1558_v11  ;;  %v1637_v12 = vsel %vm1617_vm12, %v1607_v62, %v1627_v6  ;;  %v1638_v14 = vsel %vm1618_vm13, %v1608_v63, %v1628_v8 }
 0x155   :  { %v1650_v15 = vsel %vm1640_vm4, %v1637_v12, -9e+15  ;;  %v1651_v17 = vsel %vm1640_vm4, %v1638_v14, -9e+15  ;;  %v1916_v12 = vpop.f32.mrf.mxu1 }
 0x156   :  { %v1629_v2 = vmul.f32 0.1, %v1609_v7  ;;  %v1675_v18 = vsel %vm1653_vm5, %v1650_v15, -inf  ;;  %v1678_v19 = vsel %vm1653_vm5, %v1651_v17, -inf  ;;  %vm1619_vm14 = vcmp.gt.f32.partialorder %v1609_v7, 0.0  ;;  %4678 = vmatpush3.msk.msra.mxu1 %vm2508_vm15, %v1916_v12 }
 0x157   :  { %1676 = vmax.xlane.f32.xlu0 %v1675_v18  ;;  %1679 = vmax.xlane.f32.xlu1 %v1678_v19 }
 0x158   :  { %v1639_v20 = vsel %vm1619_vm14, %v1609_v7, %v1629_v2  ;;  %v1843_v7 = vpop.f32.mrf.mxu0  ;;  %4687 = vmatprep.subr.mxu1 %v4890_v0 }
 0x159   :  { %v1652_v21 = vsel %vm1640_vm4, %v1639_v20, -9e+15  ;;  %4673 = vmatpush3.msk.msra.mxu0 %vm2508_vm15, %v1843_v7 }
 0x15a   :  { %v1681_v22 = vsel %vm1653_vm5, %v1652_v21, -inf  ;;  %v4626_v14 = vpop.f32.mrf.mxu0  ;;  %4682 = vmatprep.subr.mxu0 %v4890_v0 }
 0x15b   :  { %1682 = vmax.xlane.f32.xlu0 %v1681_v22 }
 0x1d0   :  { %v1656_v23 = vpop.xlane.xlu0 %1655 }
 0x1d1   :  { %v1684_v24 = vsub.f32 %v5251_v27, %v1656_v23 }
 0x1d3   :  { %v1694_v25 = vmul.f32 1.442695, %v1684_v24 }
 0x1d4   :  { %v1659_v26 = vpop.xlane.xlu1 %1658  ;;  %v1662_v28 = vpop.xlane.xlu0 %1661 }
 0x1d5   :  { %4824 = vpow2.f32 %v1694_v25  ;;  %v1685_v29 = vsub.f32 %v5261_v39, %v1659_v26  ;;  %v1686_v30 = vsub.f32 %v5265_v40, %v1662_v28 }
 0x1d7   :  { %v1696_v31 = vmul.f32 1.442695, %v1685_v29  ;;  %v1698_v32 = vmul.f32 1.442695, %v1686_v30 }
 0x1d8   :  { %v1665_v33 = vpop.xlane.xlu0 %1664  ;;  %v1668_v34 = vpop.xlane.xlu1 %1667 }
 0x1d9   :  { %4826 = vpow2.f32 %v1696_v31  ;;  %v1687_v35 = vsub.f32 %v1646_v53, %v1665_v33  ;;  %v1688_v36 = vsub.f32 %v1647_v54, %v1668_v34 }
 0x1da   :  { %4828 = vpow2.f32 %v1698_v32 }
 0x1db   :  { %v1700_v37 = vmul.f32 1.442695, %v1687_v35  ;;  %v1702_v38 = vmul.f32 1.442695, %v1688_v36 }
 0x1dc   :  { %v1671_v41 = vpop.xlane.xlu0 %1670  ;;  %v1674_v27 = vpop.xlane.xlu1 %1673 }
 0x1dd   :  { %4830 = vpow2.f32 %v1700_v37  ;;  %v1689_v42 = vsub.f32 %v1648_v4, %v1671_v41  ;;  %v1690_v43 = vsub.f32 %v1649_v5, %v1674_v27 }
 0x1de   :  { %4832 = vpow2.f32 %v1702_v38 }
 0x1df   :  { %v1704_v44 = vmul.f32 1.442695, %v1689_v42  ;;  %v1706_v39 = vmul.f32 1.442695, %v1690_v43 }
 0x1e0   :  { %v1677_v45 = vpop.xlane.xlu0 %1676  ;;  %v1680_v40 = vpop.xlane.xlu1 %1679 }
 0x1e1   :  { %4834 = vpow2.f32 %v1704_v44  ;;  %v1691_v46 = vsub.f32 %v1650_v15, %v1677_v45  ;;  %v1692_v47 = vsub.f32 %v1651_v17, %v1680_v40  ;;  %v4631_v15 = vpop.f32.mrf.mxu1  ;;  %v1989_v17 = vpop.f32.mrf.mxu0 }
 0x1e2   :  { %v5301_v48 = vpop.eup %4824  ;;  %4836 = vpow2.f32 %v1706_v39 }
 0x1e3   :  { %v1708_v49 = vmul.f32 1.442695, %v1691_v46  ;;  %v1710_v50 = vmul.f32 1.442695, %v1692_v47  ;;  %v1714_v51 = vsel %vm1653_vm5, %v5301_v48, 0.0  ;;  %v2062_v2 = vpop.f32.mrf.mxu1  ;;  %v4636_v18 = vpop.f32.mrf.mxu0 }
 0x1e4   :  { %v1683_v52 = vpop.xlane.xlu0 %1682  ;;  %1715 = vadd.xlane.f32.xlu1 %v1714_v51 }
 0x1e5   :  { %4838 = vpow2.f32 %v1708_v49  ;;  %v1693_v53 = vsub.f32 %v1652_v21, %v1683_v52  ;;  %v4641_v19 = vpop.f32.mrf.mxu1  ;;  %v2135_v20 = vpop.f32.mrf.mxu0 }
 0x1e6   :  { %v5305_v54 = vpop.eup %4826  ;;  %4840 = vpow2.f32 %v1710_v50 }
 0x1e7   :  { %v5307_v55 = vpop.eup %4828  ;;  %v1712_v56 = vmul.f32 1.442695, %v1693_v53  ;;  %v1717_v57 = vsel %vm1653_vm5, %v5305_v54, 0.0  ;;  %v4646_v21 = vpop.f32.mrf.mxu0 }
 0x1e8   :  { %1718 = vadd.xlane.f32.xlu0 %v1717_v57  ;;  %v1720_v58 = vsel %vm1653_vm5, %v5307_v55, 0.0  ;;  %v2208_v22 = vpop.f32.mrf.mxu1 }
 0x1e9   :  { %4842 = vpow2.f32 %v1712_v56  ;;  %1721 = vadd.xlane.f32.xlu1 %v1720_v58  ;;  %v2281_v23 = vpop.f32.mrf.mxu0 }
 0x1ea   :  { %v5313_v59 = vpop.eup %4830  ;;  %v4651_v24 = vpop.f32.mrf.mxu1 }
 0x1eb   :  { %v5315_v60 = vpop.eup %4832  ;;  %v1723_v61 = vsel %vm1653_vm5, %v5313_v59, 0.0  ;;  %v4656_v25 = vpop.f32.mrf.mxu0 }
 0x1ec   :  { %1724 = vadd.xlane.f32.xlu0 %v1723_v61  ;;  %v1726_v62 = vsel %vm1653_vm5, %v5315_v60, 0.0  ;;  %v5345_v26 = vpop.f32.mrf.mxu1 }
 0x1ed   :  { %1727 = vadd.xlane.f32.xlu1 %v1726_v62  ;;  %v5347_v28 = vpop.f32.mrf.mxu0  ;;  %v3328_v62 = vld [vmem:[%s5627_s5 + $0x10] sm:$0x3] }
 0x1ee   :  { %v5321_v63 = vpop.eup %4834  ;;  %v4661_v29 = vpop.f32.mrf.mxu1 }
 0x1ef   :  { %v5323_v1 = vpop.eup %4836  ;;  %v1729_v3 = vsel %vm1653_vm5, %v5321_v63, 0.0  ;;  %v4666_v30 = vpop.f32.mrf.mxu0 }
 0x1f0   :  { %1730 = vadd.xlane.f32.xlu0 %v1729_v3  ;;  %v1732_v4 = vsel %vm1653_vm5, %v5323_v1, 0.0  ;;  %v5349_v31 = vpop.f32.mrf.mxu1  ;;  %v3331_v3 = vld [vmem:[%s5627_s5 + $0x28] sm:$0x3] }
 0x1f1   :  { %1733 = vadd.xlane.f32.xlu1 %v1732_v4  ;;  %v3330_v4 = vld [vmem:[%s5627_s5 + $0x20] sm:$0xff] }
 0x1f2   :  { %v5329_v5 = vpop.eup %4838  ;;  %v4671_v32 = vpop.f32.mrf.mxu1 }
 0x1f3   :  { %v5331_v6 = vpop.eup %4840  ;;  %v1735_v8 = vsel %vm1653_vm5, %v5329_v5, 0.0 }
 0x1f4   :  { %1736 = vadd.xlane.f32.xlu0 %v1735_v8  ;;  %v1738_v9 = vsel %vm1653_vm5, %v5331_v6, 0.0 }
 0x1f5   :  { %1739 = vadd.xlane.f32.xlu1 %v1738_v9 }
 0x1f6   :  { %v5337_v10 = vpop.eup %4842 }
 0x1f7   :  { %v1741_v11 = vsel %vm1653_vm5, %v5337_v10, 0.0 }
 0x1f8   :  { %1742 = vadd.xlane.f32.xlu0 %v1741_v11 }
 0x26d   :  { %v1716_v33 = vpop.xlane.xlu1 %1715 }
 0x26e   :  { %4844 = vrcp.f32 %v1716_v33 }
 0x271   :  { %v1719_v34 = vpop.xlane.xlu0 %1718 }
 0x272   :  { %4846 = vrcp.f32 %v1719_v34  ;;  %v1722_v35 = vpop.xlane.xlu1 %1721 }
 0x273   :  { %4848 = vrcp.f32 %v1722_v35 }
 0x275   :  { %v1725_v36 = vpop.xlane.xlu0 %1724 }
 0x276   :  { %4850 = vrcp.f32 %v1725_v36  ;;  %v1728_v37 = vpop.xlane.xlu1 %1727 }
 0x277   :  { %4852 = vrcp.f32 %v1728_v37 }
 0x279   :  { %v1731_v38 = vpop.xlane.xlu0 %1730 }
 0x27a   :  { %4854 = vrcp.f32 %v1731_v38  ;;  %v1734_v41 = vpop.xlane.xlu1 %1733 }
 0x27b   :  { %v4845_v27 = vpop.eup %4844  ;;  %4856 = vrcp.f32 %v1734_v41 }
 0x27c   :  { %v1754_v42 = vmul.f32 %v4845_v27, %v5301_v48 }
 0x27d   :  { %v1737_v43 = vpop.xlane.xlu0 %1736 }
 0x27e   :  { %4858 = vrcp.f32 %v1737_v43  ;;  %v1740_v44 = vpop.xlane.xlu1 %1739  ;;  %4675 = vmatmul.mubr.msk.f32.vlgmr.msra.gmra.mxu0 %vm2504_vm0, %v1754_v42 }
 0x27f   :  { %v4847_v39 = vpop.eup %4846  ;;  %4860 = vrcp.f32 %v1740_v44  ;;  %4683 = vmatpush3.msk.msra.mxu0 %vm2508_vm15, %v1989_v17  ;;  %4684 = vmatprep.mubr.msk.f32.mxu0 %vm4891_vm2, %v4890_v0 }
 0x280   :  { %v4849_v45 = vpop.eup %4848  ;;  %v1755_v40 = vmul.f32 %v4847_v39, %v5305_v54  ;;  %4692 = vmatprep.subr.mxu0 %v4890_v0  ;;  %v3334_v39 = vld [vmem:[%s5627_s5 + $0x40] sm:$0x3] }
 0x281   :  { %v1743_v46 = vpop.xlane.xlu0 %1742  ;;  %v1756_v47 = vmul.f32 %v4849_v45, %v5307_v55 }
 0x282   :  { %4862 = vrcp.f32 %v1743_v46  ;;  %4680 = vmatmul.mubr.msk.f32.vlgmr.msra.gmra.mxu1 %vm2504_vm0, %v1755_v40 }
 0x283   :  { %v4851_v48 = vpop.eup %4850  ;;  %4685 = vmatmul.mubr.msk.f32.vlgmr.msra.gmra.mxu0 %vm2504_vm0, %v1756_v47  ;;  %4688 = vmatpush3.msk.msra.mxu1 %vm2508_vm15, %v2062_v2  ;;  %v3333_v47 = vld [vmem:[%s5627_s5 + $0x38] sm:$0xff] }
 0x284   :  { %v4853_v49 = vpop.eup %4852  ;;  %4689 = vmatprep.mubr.msk.f32.mxu1 %vm4891_vm2, %v4890_v0  ;;  %4693 = vmatpush3.msk.msra.mxu0 %vm2508_vm15, %v2135_v20  ;;  %v1757_v50 = vmul.f32 %v4851_v48, %v5313_v59 }
 0x285   :  { %4694 = vmatprep.mubr.msk.f32.mxu0 %vm4891_vm2, %v4890_v0  ;;  %v1758_v51 = vmul.f32 %v4853_v49, %v5315_v60  ;;  %4697 = vmatprep.subr.mxu1 %v4890_v0 }
 0x286   :  { %4690 = vmatmul.mubr.msk.f32.vlgmr.msra.gmra.mxu1 %vm2504_vm0, %v1757_v50  ;;  %4702 = vmatprep.subr.mxu0 %v4890_v0 }
 0x287   :  { %v4855_v52 = vpop.eup %4854  ;;  %4695 = vmatmul.mubr.msk.f32.vlgmr.msra.gmra.mxu0 %vm2504_vm0, %v1758_v51  ;;  %4698 = vmatpush3.msk.msra.mxu1 %vm2508_vm15, %v2208_v22  ;;  %v3332_v51 = vld [vmem:[%s5627_s5 + $0x30] sm:$0xff] }
 0x288   :  { %v4857_v53 = vpop.eup %4856  ;;  %4699 = vmatprep.mubr.msk.f32.mxu1 %vm4891_vm2, %v4890_v0  ;;  %4703 = vmatpush3.msk.msra.mxu0 %vm2508_vm15, %v2281_v23  ;;  %v1759_v54 = vmul.f32 %v4855_v52, %v5321_v63  ;;  %v3327_v63 = vld [vmem:[%s5627_s5 + $0x8] sm:$0xff] }
 0x289   :  { %4704 = vmatprep.mubr.msk.f32.mxu0 %vm4891_vm2, %v4890_v0  ;;  %v1760_v55 = vmul.f32 %v4857_v53, %v5323_v1  ;;  %4707 = vmatprep.subr.mxu1 %v4890_v0  ;;  %v3326_v1 = vld [vmem:[%s5627_s5] sm:$0xff] }
 0x28a   :  { %4700 = vmatmul.mubr.msk.f32.vlgmr.msra.gmra.mxu1 %vm2504_vm0, %v1759_v54  ;;  %4712 = vmatprep.subr.mxu0 %v4890_v0  ;;  %v3337_v54 = vld [vmem:[%s5627_s5 + $0x58] sm:$0x3] }
 0x28b   :  { %v4859_v56 = vpop.eup %4858  ;;  %4705 = vmatmul.mubr.msk.f32.vlgmr.msra.gmra.mxu0 %vm2504_vm0, %v1760_v55  ;;  %4708 = vmatpush3.msk.msra.mxu1 %vm2508_vm15, %v5345_v26 }
 0x28c   :  { %v4861_v57 = vpop.eup %4860  ;;  %4709 = vmatprep.mubr.msk.f32.mxu1 %vm4891_vm2, %v4890_v0  ;;  %4713 = vmatpush3.msk.msra.mxu0 %vm2508_vm15, %v5347_v28  ;;  %v1761_v58 = vmul.f32 %v4859_v56, %v5329_v5  ;;  %v3329_v5 = vld [vmem:[%s5627_s5 + $0x18] sm:$0xff] }
 0x28d   :  { %4714 = vmatprep.mubr.msk.f32.mxu0 %vm4891_vm2, %v4890_v0  ;;  %v1762_v59 = vmul.f32 %v4861_v57, %v5331_v6  ;;  %4717 = vmatprep.subr.mxu1 %v4890_v0 }
 0x28e   :  { %4710 = vmatmul.mubr.msk.f32.vlgmr.msra.gmra.mxu1 %vm2504_vm0, %v1761_v58  ;;  %4722 = vmatprep.subr.mxu0 %v4890_v0  ;;  %v3336_v58 = vld [vmem:[%s5627_s5 + $0x50] sm:$0xff] }
 0x28f   :  { %v4863_v60 = vpop.eup %4862  ;;  %4715 = vmatmul.mubr.msk.f32.vlgmr.msra.gmra.mxu0 %vm2504_vm0, %v1762_v59  ;;  %4718 = vmatpush3.msk.msra.mxu1 %vm2508_vm15, %v5349_v31 }
 0x290   :  { %4719 = vmatprep.mubr.msk.f32.mxu1 %vm4891_vm2, %v4890_v0  ;;  %v1763_v61 = vmul.f32 %v4863_v60, %v5337_v10  ;;  %4731 = vmatprep.subr.mxu1 %v4890_v0 }
 0x291   :  { %4728 = vmatprep.mubr.msk.f32.mxu0 %vm4891_vm2, %v4890_v0  ;;  %4723 = vmatpush3.msk.msra.mxu0 %vm3360_vm1, %v3328_v62  ;;  %v3340_v62 = vld [vmem:[%s5627_s5 + $0x70] sm:$0x3] }
 0x292   :  { %4720 = vmatmul.mubr.msk.f32.vlgmr.msra.gmra.mxu1 %vm2504_vm0, %v1763_v61  ;;  %4724 = vmatprep.subr.mxu0 %v4890_v0 }
 0x293   :  { %4737 = vmatprep.mubr.msk.f32.mxu1 %vm4891_vm2, %v4890_v0  ;;  %4725 = vmatpush3.msra.mxu0 %v3327_v63 }
 0x294   :  { %4726 = vmatprep.subr.mxu0 %v4890_v0  ;;  %4732 = vmatpush3.msk.msra.mxu1 %vm3360_vm1, %v3331_v3  ;;  %v3339_v3 = vld [vmem:[%s5627_s5 + $0x68] sm:$0xff] }
 0x295   :  { %4727 = vmatpush3.msra.mxu0 %v3326_v1  ;;  %4733 = vmatprep.subr.mxu1 %v4890_v0  ;;  %v3335_v1 = vld [vmem:[%s5627_s5 + $0x48] sm:$0xff] }
 0x296   :  { %4740 = vmatprep.subr.mxu0 %v4890_v0  ;;  %4734 = vmatpush3.msra.mxu1 %v3330_v4 }
 0x297   :  { %4735 = vmatprep.subr.mxu1 %v4890_v0 }
 0x298   :  { %4736 = vmatpush3.msra.mxu1 %v3329_v5 }
 0x299   :  { %4749 = vmatprep.subr.mxu1 %v4890_v0 }
 0x33e   :  { %v2578_v6 = vpop.f32.mrf.mxu0 }
 0x33f   :  { %v3276_v8 = vmin.f32 %v2578_v6, 0.0  ;;  %vm3266_vm6 = vcmp.gt.f32.partialorder %v2578_v6, 0.0 }
 0x340   :  { %v4676_v9 = vpop.f32.mrf.mxu0 }
 0x341   :  { %v3286_v10 = vmul.f32 1.442695, %v3276_v8  ;;  %v3338_v8 = vld [vmem:[%s5627_s5 + $0x60] sm:$0xff]  ;;  %v3343_v9 = vld [vmem:[%s5627_s5 + $0x88] sm:$0x3] }
 0x342   :  { %v2654_v11 = vpop.f32.mrf.mxu1 }
 0x343   :  { %4864 = vpow2.f32 %v3286_v10  ;;  %v3277_v7 = vmin.f32 %v2654_v11, 0.0  ;;  %v2730_v12 = vpop.f32.mrf.mxu0  ;;  %vm3267_vm7 = vcmp.gt.f32.partialorder %v2654_v11, 0.0 }
 0x344   :  { %v3278_v14 = vmin.f32 %v2730_v12, 0.0  ;;  %v4681_v15 = vpop.f32.mrf.mxu1  ;;  %vm3268_vm8 = vcmp.gt.f32.partialorder %v2730_v12, 0.0 }
 0x345   :  { %v3288_v17 = vmul.f32 1.442695, %v3277_v7  ;;  %v4686_v2 = vpop.f32.mrf.mxu0 }
 0x346   :  { %v3290_v18 = vmul.f32 1.442695, %v3278_v14  ;;  %v5436_v19 = vpop.f32.mrf.mxu1  ;;  %v3345_v2 = vld [vmem:[%s5627_s5 + $0x98] sm:$0xff] }
 0x347   :  { %4866 = vpow2.f32 %v3288_v17  ;;  %v3279_v20 = vmin.f32 %v5436_v19, 0.0  ;;  %v5439_v21 = vpop.f32.mrf.mxu0  ;;  %vm3269_vm9 = vcmp.gt.f32.partialorder %v5436_v19, 0.0  ;;  %v3341_v17 = vld [vmem:[%s5627_s5 + $0x78] sm:$0xff] }
 0x348   :  { %4868 = vpow2.f32 %v3290_v18  ;;  %v3280_v22 = vmin.f32 %v5439_v21, 0.0  ;;  %v4691_v23 = vpop.f32.mrf.mxu1  ;;  %vm3270_vm10 = vcmp.gt.f32.partialorder %v5439_v21, 0.0 }
 0x349   :  { %v3292_v24 = vmul.f32 1.442695, %v3279_v20  ;;  %v4696_v25 = vpop.f32.mrf.mxu0  ;;  %v3348_v23 = vld [vmem:[%s5627_s5 + $0xb0] sm:$0xff] }
 0x34a   :  { %v3294_v26 = vmul.f32 1.442695, %v3280_v22  ;;  %v5442_v28 = vpop.f32.mrf.mxu1  ;;  %v3352_v25 = vld [vmem:[%s5627_s5 + $0xd0] sm:$0x3] }
 0x34b   :  { %4870 = vpow2.f32 %v3292_v24  ;;  %v3281_v29 = vmin.f32 %v5442_v28, 0.0  ;;  %v5445_v30 = vpop.f32.mrf.mxu0  ;;  %vm3271_vm11 = vcmp.gt.f32.partialorder %v5442_v28, 0.0 }
 0x34c   :  { %v4701_v31 = vpop.f32.mrf.mxu1  ;;  %4872 = vpow2.f32 %v3294_v26  ;;  %v3282_v32 = vmin.f32 %v5445_v30, 0.0  ;;  %vm3272_vm12 = vcmp.gt.f32.partialorder %v5445_v30, 0.0 }
 0x34d   :  { %v4706_v33 = vpop.f32.mrf.mxu0  ;;  %v3296_v34 = vmul.f32 1.442695, %v3281_v29  ;;  %v3347_v29 = vld [vmem:[%s5627_s5 + $0xa8] sm:$0xff] }
 0x34e   :  { %v5448_v35 = vpop.f32.mrf.mxu1  ;;  %v3298_v27 = vmul.f32 1.442695, %v3282_v32  ;;  %v3350_v32 = vld [vmem:[%s5627_s5 + $0xc0] sm:$0xff] }
 0x34f   :  { %v5450_v36 = vpop.f32.mrf.mxu0  ;;  %4874 = vpow2.f32 %v3296_v34  ;;  %v3283_v43 = vmin.f32 %v5448_v35, 0.0  ;;  %vm3273_vm13 = vcmp.gt.f32.partialorder %v5448_v35, 0.0 }
 0x350   :  { %v4865_v37 = vpop.eup %4864  ;;  %v4711_v38 = vpop.f32.mrf.mxu1  ;;  %4876 = vpow2.f32 %v3298_v27  ;;  %v3284_v50 = vmin.f32 %v5450_v36, 0.0  ;;  %vm3274_vm14 = vcmp.gt.f32.partialorder %v5450_v36, 0.0  ;;  %v3353_v27 = vld [vmem:[%s5627_s5 + $0xd8] sm:$0xff] }
 0x351   :  { %v4367_v41 = vadd.f32 -1.0, %v4865_v37  ;;  %v4716_v42 = vpop.f32.mrf.mxu0  ;;  %v3300_v53 = vmul.f32 1.442695, %v3283_v43  ;;  %v3355_v37 = vld [vmem:[%s5627_s5 + $0xe8] sm:$0x3] }
 0x352   :  { %v5453_v44 = vpop.f32.mrf.mxu1  ;;  %v3302_v60 = vmul.f32 1.442695, %v3284_v50 }
 0x353   :  { %v3316_v45 = vsel %vm3266_vm6, %v2578_v6, %v4367_v41  ;;  %v3285_v61 = vmin.f32 %v5453_v44, 0.0  ;;  %4878 = vpow2.f32 %v3300_v53  ;;  %vm3275_vm6 = vcmp.gt.f32.partialorder %v5453_v44, 0.0 }
 0x354   :  { %v4867_v40 = vpop.eup %4866  ;;  %v4721_v46 = vpop.f32.mrf.mxu1  ;;  %4729 = vmatmul.mubr.msk.f32.vlgmr.msra.gmra.mxu0 %vm3356_vm3, %v3316_v45  ;;  %4880 = vpow2.f32 %v3302_v60 }
 0x355   :  { %v4869_v48 = vpop.eup %4868  ;;  %v4368_v49 = vadd.f32 -1.0, %v4867_v40  ;;  %4741 = vmatpush3.msk.msra.mxu0 %vm3360_vm1, %v3334_v39  ;;  %4746 = vmatprep.mubr.msk.f32.mxu0 %vm4891_vm2, %v4890_v0  ;;  %v3304_v6 = vmul.f32 1.442695, %v3285_v61 }
 0x356   :  { %v4369_v52 = vadd.f32 -1.0, %v4869_v48  ;;  %4742 = vmatprep.subr.mxu0 %v4890_v0 }
 0x357   :  { %v3317_v55 = vsel %vm3267_vm7, %v2654_v11, %v4368_v49  ;;  %4743 = vmatpush3.msra.mxu0 %v3333_v47  ;;  %v3342_v11 = vld [vmem:[%s5627_s5 + $0x80] sm:$0xff]  ;;  %4882 = vpow2.f32 %v3304_v6 }
 0x358   :  { %v4871_v56 = vpop.eup %4870  ;;  %v3318_v57 = vsel %vm3268_vm8, %v2730_v12, %v4369_v52  ;;  %4744 = vmatprep.subr.mxu0 %v4890_v0  ;;  %4738 = vmatmul.mubr.msk.f32.vlgmr.msra.gmra.mxu1 %vm3356_vm3, %v3317_v55  ;;  %v3346_v12 = vld [vmem:[%s5627_s5 + $0xa0] sm:$0x3] }
 0x359   :  { %v4370_v59 = vadd.f32 -1.0, %v4871_v56  ;;  %4745 = vmatpush3.msra.mxu0 %v3332_v51  ;;  %4750 = vmatpush3.msk.msra.mxu1 %vm3360_vm1, %v3337_v54  ;;  %v4873_v63 = vpop.eup %4872 }
 0x35a   :  { %4747 = vmatmul.mubr.msk.f32.vlgmr.msra.gmra.mxu0 %vm3356_vm3, %v3318_v57  ;;  %4751 = vmatprep.subr.mxu1 %v4890_v0  ;;  %v4371_v5 = vadd.f32 -1.0, %v4873_v63 }
 0x35b   :  { %4758 = vmatprep.subr.mxu0 %v4890_v0  ;;  %4752 = vmatpush3.msra.mxu1 %v3336_v58  ;;  %v3319_v4 = vsel %vm3269_vm9, %v5436_v19, %v4370_v59  ;;  %v3344_v19 = vld [vmem:[%s5627_s5 + $0x90] sm:$0xff] }
 0x35c   :  { %4759 = vmatpush3.msk.msra.mxu0 %vm3360_vm1, %v3340_v62  ;;  %4753 = vmatprep.subr.mxu1 %v4890_v0  ;;  %v4875_v10 = vpop.eup %4874  ;;  %v3320_v7 = vsel %vm3270_vm10, %v5439_v21, %v4371_v5  ;;  %v3349_v21 = vld [vmem:[%s5627_s5 + $0xb8] sm:$0x3] }
 0x35d   :  { %4760 = vmatprep.subr.mxu0 %v4890_v0  ;;  %4754 = vmatpush3.msra.mxu1 %v3335_v1  ;;  %v4877_v14 = vpop.eup %4876  ;;  %v4372_v15 = vadd.f32 -1.0, %v4875_v10 }
 0x35e   :  { %4755 = vmatprep.mubr.msk.f32.mxu1 %vm4891_vm2, %v4890_v0  ;;  %4761 = vmatpush3.msra.mxu0 %v3339_v3  ;;  %v4373_v18 = vadd.f32 -1.0, %v4877_v14 }
 0x35f   :  { %4756 = vmatmul.mubr.msk.f32.vlgmr.msra.gmra.mxu1 %vm3356_vm3, %v3319_v4  ;;  %4762 = vmatprep.subr.mxu0 %v4890_v0  ;;  %v3321_v20 = vsel %vm3271_vm11, %v5442_v28, %v4372_v15 }
 0x360   :  { %4767 = vmatprep.subr.mxu1 %v4890_v0  ;;  %4763 = vmatpush3.msra.mxu0 %v3338_v8  ;;  %v4879_v22 = vpop.eup %4878  ;;  %v3322_v24 = vsel %vm3272_vm12, %v5445_v30, %v4373_v18  ;;  %v3351_v30 = vld [vmem:[%s5627_s5 + $0xc8] sm:$0xff] }
 0x361   :  { %4764 = vmatprep.mubr.msk.f32.mxu0 %vm4891_vm2, %v4890_v0  ;;  %4768 = vmatpush3.msk.msra.mxu1 %vm3360_vm1, %v3343_v9  ;;  %v4881_v26 = vpop.eup %4880  ;;  %v4374_v28 = vadd.f32 -1.0, %v4879_v22 }
 0x362   :  { %4765 = vmatmul.mubr.msk.f32.vlgmr.msra.gmra.mxu0 %vm3356_vm3, %v3320_v7  ;;  %4769 = vmatprep.subr.mxu1 %v4890_v0  ;;  %v4375_v31 = vadd.f32 -1.0, %v4881_v26 }
 0x363   :  { %4776 = vmatprep.subr.mxu0 %v4890_v0  ;;  %4770 = vmatpush3.msra.mxu1 %v3342_v11  ;;  %v3323_v34 = vsel %vm3273_vm13, %v5448_v35, %v4374_v28  ;;  %v3354_v35 = vld [vmem:[%s5627_s5 + $0xe0] sm:$0xff]  ;;  %s4893_s5 = smov 127  }
 0x364   :  { %4777 = vmatpush3.msk.msra.mxu0 %vm3360_vm1, %v3346_v12  ;;  %4771 = vmatprep.subr.mxu1 %v4890_v0  ;;  %v4883_v33 = vpop.eup %4882  ;;  %v3324_v38 = vsel %vm3274_vm14, %v5450_v36, %v4375_v31 }
 0x365   :  { %4778 = vmatprep.subr.mxu0 %v4890_v0  ;;  %4772 = vmatpush3.msra.mxu1 %v3341_v17  ;;  %v4376_v41 = vadd.f32 -1.0, %v4883_v33 }
 0x366   :  { %4773 = vmatprep.mubr.msk.f32.mxu1 %vm4891_vm2, %v4890_v0  ;;  %4779 = vmatpush3.msra.mxu0 %v3345_v2 }
 0x367   :  { %4774 = vmatmul.mubr.msk.f32.vlgmr.msra.gmra.mxu1 %vm3356_vm3, %v3321_v20  ;;  %4780 = vmatprep.subr.mxu0 %v4890_v0  ;;  %v3325_v36 = vsel %vm3275_vm6, %v5453_v44, %v4376_v41 }
 0x368   :  { %4785 = vmatprep.subr.mxu1 %v4890_v0  ;;  %4781 = vmatpush3.msra.mxu0 %v3344_v19 }
 0x369   :  { %4782 = vmatprep.mubr.msk.f32.mxu0 %vm4891_vm2, %v4890_v0  ;;  %4786 = vmatpush3.msk.msra.mxu1 %vm3360_vm1, %v3349_v21 }
 0x36a   :  { %4783 = vmatmul.mubr.msk.f32.vlgmr.msra.gmra.mxu0 %vm3356_vm3, %v3322_v24  ;;  %4787 = vmatprep.subr.mxu1 %v4890_v0 }
 0x36b   :  { %4794 = vmatprep.subr.mxu0 %v4890_v0  ;;  %4788 = vmatpush3.msra.mxu1 %v3348_v23 }
 0x36c   :  { %4795 = vmatpush3.msk.msra.mxu0 %vm3360_vm1, %v3352_v25  ;;  %4789 = vmatprep.subr.mxu1 %v4890_v0 }
 0x36d   :  { %4796 = vmatprep.subr.mxu0 %v4890_v0  ;;  %4790 = vmatpush3.msra.mxu1 %v3347_v29 }
 0x36e   :  { %4791 = vmatprep.mubr.msk.f32.mxu1 %vm4891_vm2, %v4890_v0  ;;  %4797 = vmatpush3.msra.mxu0 %v3351_v30 }
 0x36f   :  { %4792 = vmatmul.mubr.msk.f32.vlgmr.msra.gmra.mxu1 %vm3356_vm3, %v3323_v34  ;;  %4798 = vmatprep.subr.mxu0 %v4890_v0 }
 0x370   :  { %4803 = vmatprep.subr.mxu1 %v4890_v0  ;;  %4799 = vmatpush3.msra.mxu0 %v3350_v32 }
 0x371   :  { %4800 = vmatprep.mubr.msk.f32.mxu0 %vm4891_vm2, %v4890_v0  ;;  %4804 = vmatpush3.msk.msra.mxu1 %vm3360_vm1, %v3355_v37  ;;  %vm4118_vm1 = vcmask 59392  }
 0x372   :  { %4801 = vmatmul.mubr.msk.f32.vlgmr.msra.gmra.mxu0 %vm3356_vm3, %v3324_v38  ;;  %4805 = vmatprep.subr.mxu1 %v4890_v0 }
 0x373   :  { %4806 = vmatpush3.msra.mxu1 %v3354_v35  ;;  %4809 = vmatprep.mubr.msk.f32.mxu1 %vm4891_vm2, %v4890_v0 }
 0x374   :  { %4807 = vmatprep.subr.mxu1 %v4890_v0  ;;  %4812 = vmatprep.subr.mxu0 %v4890_v0 }
 0x375   :  { %4808 = vmatpush3.msra.mxu1 %v3353_v27  ;;  %4814 = vmatprep.mubr.msk.f32.mxu0 %vm4891_vm2, %v4890_v0 }
 0x376   :  { %4810 = vmatmul.mubr.msk.f32.vlgmr.msra.gmra.mxu1 %vm3356_vm3, %v3325_v36 }
 0x414   :  { %v3430_v42 = vpop.f32.mrf.mxu0 }
 0x415   :  { %v4119_v48 = vsel %vm4118_vm1, %v3430_v42, 0.0 }
 0x416   :  { %v4730_v43 = vpop.f32.mrf.mxu0 }
 0x418   :  { %v3506_v39 = vpop.f32.mrf.mxu1 }
 0x419   :  { %v4120_v46 = vsel %vm4118_vm1, %v3506_v39, 0.0 }
 0x41a   :  { %v3582_v45 = vpop.f32.mrf.mxu0  ;;  %v4739_v40 = vpop.f32.mrf.mxu1  ;;  %v4121_v49 = vadd.f32 %v4120_v46, %v4119_v48 }
 0x41b   :  { %v4122_v44 = vsel %vm4118_vm1, %v3582_v45, 0.0 }
 0x41c   :  { %v4748_v47 = vpop.f32.mrf.mxu0  ;;  %v4123_v52 = vadd.f32 %v4122_v44, %v4121_v49 }
 0x41f   :  { %v3658_v50 = vpop.f32.mrf.mxu1 }
 0x420   :  { %v4124_v53 = vsel %vm4118_vm1, %v3658_v50, 0.0 }
 0x421   :  { %v4757_v51 = vpop.f32.mrf.mxu1  ;;  %v4125_v55 = vadd.f32 %v4124_v53, %v4123_v52 }
 0x422   :  { %v3734_v0 = vpop.f32.mrf.mxu0 }
 0x423   :  { %v4126_v56 = vsel %vm4118_vm1, %v3734_v0, 0.0 }
 0x424   :  { %v4766_v54 = vpop.f32.mrf.mxu0  ;;  %v4127_v60 = vadd.f32 %v4126_v56, %v4125_v55 }
 0x427   :  { %v3810_v57 = vpop.f32.mrf.mxu1 }
 0x428   :  { %v4128_v58 = vsel %vm4118_vm1, %v3810_v57, 0.0 }
 0x429   :  { %v4775_v59 = vpop.f32.mrf.mxu1  ;;  %v4129_v62 = vadd.f32 %v4128_v58, %v4127_v60 }
 0x42a   :  { %v3886_v61 = vpop.f32.mrf.mxu0 }
 0x42b   :  { %v4130_v1 = vsel %vm4118_vm1, %v3886_v61, 0.0 }
 0x42c   :  { %v4784_v63 = vpop.f32.mrf.mxu0  ;;  %v4131_v4 = vadd.f32 %v4130_v1, %v4129_v62 }
 0x42f   :  { %v3962_v3 = vpop.f32.mrf.mxu1 }
 0x430   :  { %v4132_v5 = vsel %vm4118_vm1, %v3962_v3, 0.0 }
 0x431   :  { %v4793_v6 = vpop.f32.mrf.mxu1  ;;  %v4133_v8 = vadd.f32 %v4132_v5, %v4131_v4 }
 0x432   :  { %v4038_v9 = vpop.f32.mrf.mxu0 }
 0x433   :  { %v4134_v10 = vsel %vm4118_vm1, %v4038_v9, 0.0 }
 0x434   :  { %v4802_v11 = vpop.f32.mrf.mxu0  ;;  %v4135_v7 = vadd.f32 %v4134_v10, %v4133_v8 }
 0x436   :  { %v4114_v12 = vpop.f32.mrf.mxu1 }
 0x437   :  { %v4136_v14 = vsel %vm4118_vm1, %v4114_v12, 0.0 }
 0x438   :  { %v4137_v15 = vadd.f32 %v4136_v14, %v4135_v7  ;;  %v4811_v17 = vpop.f32.mrf.mxu1 }
 0x43a   :  { %4175 = vperm.xlu0 %4822, %v4137_v15   ;;  %4139 = vrot.lane.b32.xlu1 %v4137_v15, %s4893_s5 }
 0x4ac   :  { %v4140_v2 = vpop.permute.xlu1 %4139 }
 0x4ad   :  { %4142 = vxpose.xlu1.b32.start.end [1/1] (short) (narrow) %v4140_v2, 8 }
 0x4b5   :  { %v4176_v20 = vpop.permute.xlu0 %4175 }
 0x4cb   :  { %4198 = vrot.lane.b32.xlu1 %v4137_v15, %s4894_s7 }
 0x529   :  { %v4158_v18 = vpop.trf.xlu1 }
 0x52a   :  { %v4181_v19 = vrot.slane %v4158_v18, %v5231_v13 }
 0x52c   :  { %v4182_v21 = vadd.f32 %v4181_v19, %v4176_v20 }
 0x52e   :  { %vm4183_vm2 = vcmp.gt.f32.partialorder %v4182_v21, 0.0  ;;  %v4184_v22 = vmul.f32 0.1, %v4182_v21 }
 0x530   :  { %v4185_v23 = vsel %vm4183_vm2, %v4182_v21, %v4184_v22 }
 0x531   :  { %v4186_v24 = vsel %vm1640_vm4, %v4185_v23, -9e+15  ;;  %vm4281_vm4 = vcmask 43008  }
 0x532   :  { %v4187_v25 = vsel %vm1653_vm5, %v4186_v24, -inf }
 0x533   :  { %4188 = vmax.xlane.f32.xlu0 %v4187_v25 }
 0x53d   :  { %v4199_v26 = vpop.permute.xlu1 %4198 }
 0x53e   :  { %4813 = vmatpush3.msk.msra.mxu0 %vm2508_vm15, %v4199_v26 }
 0x5bc   :  { %v4189_v28 = vpop.xlane.xlu0 %4188 }
 0x5bd   :  { %v4190_v29 = vsub.f32 %v4186_v24, %v4189_v28 }
 0x5bf   :  { %v4191_v30 = vmul.f32 1.442695, %v4190_v29 }
 0x5c1   :  { %4884 = vpow2.f32 %v4191_v30 }
 0x5ce   :  { %v4885_v31 = vpop.eup %4884 }
 0x5cf   :  { %v4193_v13 = vsel %vm1653_vm5, %v4885_v31, 0.0 }
 0x5d0   :  { %4194 = vadd.xlane.f32.xlu0 %v4193_v13 }
 0x659   :  { %v4195_v32 = vpop.xlane.xlu0 %4194 }
 0x65a   :  { %4886 = vrcp.f32 %v4195_v32 }
 0x667   :  { %v4887_v33 = vpop.eup %4886 }
 0x668   :  { %v4197_v34 = vmul.f32 %v4887_v33, %v4885_v31 }
 0x66a   :  { %4815 = vmatmul.mubr.msk.f32.vlgmr.msra.gmra.mxu0 %vm2504_vm0, %v4197_v34 }
 0x72a   :  { %v4271_v16 = vpop.f32.mrf.mxu0 }
 0x72b   :  { %v4276_v37 = vmin.f32 %v4271_v16, 0.0  ;;  %vm4275_vm15 = vcmp.gt.f32.partialorder %v4271_v16, 0.0 }
 0x72c   :  { %v4816_v35 = vpop.f32.mrf.mxu0 }
 0x72d   :  { %v4277_v38 = vmul.f32 1.442695, %v4276_v37 }
 0x72f   :  { %4888 = vpow2.f32 %v4277_v38 }
 0x73c   :  { %v4889_v41 = vpop.eup %4888 }
 0x73d   :  { %v4399_v27 = vadd.f32 -1.0, %v4889_v41 }
 0x73f   :  { %v4280_v36 = vsel %vm4275_vm15, %v4271_v16, %v4399_v27 }
 0x740   :  { %4282 = vst.msk [vmem:[%s5628_s6] sm:$0x7] %vm4281_vm4, %v4280_v36 }

</bundles_post_ra>
